<compile_context>
chip_gen: v6e
topology: v6e:2x2x1
jax: 0.10.0
libtpu: 0.0.40
codegen_flags: <defaults>
</compile_context>

<pallas_src>
import functools

import numpy as np
import jax
import jax.numpy as jnp
from jax.experimental import pallas as pl
from jax.experimental.pallas import tpu as pltpu


def _sharpen_kernel(x_ref, coeff_ref, o_ref, *, W, clamp):
    """One tile: (rows_tile, H*W) — each row is one flattened image plane."""
    x = x_ref[...]
    L = x.shape[-1]
    xf = x.astype(jnp.float32)

    # Separable 3x3:  [[1,1,1],[1,5,1],[1,1,1]] = (1,1,1)(x)(1,1,1) + 4*center.
    # Rolls are XLU ops that cannot fuse elementwise, so each rolled copy
    # materializes a tile-sized VMEM temp — accumulate in place to keep only
    # {xf, t, acc} live and let rows_tile grow.
    t = xf + pltpu.roll(x, W % L, axis=1).astype(jnp.float32)        # + up
    t = t + pltpu.roll(x, (L - W) % L, axis=1).astype(jnp.float32)   # + down
    acc = t + pltpu.roll(t, 1, axis=1)                               # + left
    acc = acc + pltpu.roll(t, L - 1, axis=1)                         # + right
    acc = acc + 4.0 * xf                                             # extra center
    degenerate = jnp.clip(acc * (1.0 / 13.0), 0.0, 1.0)

    # coeff = factor * interior_mask, shape (1, L), broadcast over rows.
    # Border coeff == 0 keeps the original pixel, so wrap-around pollution from
    # the circular rolls (which only hits border pixels) never reaches output.
    out = xf + coeff_ref[...] * (degenerate - xf)
    if clamp:
        out = jnp.clip(out, 0.0, 1.0)
    o_ref[...] = out.astype(o_ref.dtype)


@functools.partial(jax.jit, static_argnums=(1, 2))
def _sharpen_impl(x, factor, rows_tile):
    N, C, H, W = x.shape
    NC, L = N * C, H * W
    # TODO(synk): if H*W is not a multiple of 128 the output stores become
    # masked (vst.msk); prefer arranging/padding shapes upstream rather than
    # padding here (that would add full-array HBM copies to a BW-bound kernel).
    x2d = x.reshape(NC, L)

    # factor * interior mask (1-pixel border keeps the original pixel value).
    r = jnp.arange(H)[:, None]
    c = jnp.arange(W)[None, :]
    interior = (r >= 1) & (r <= H - 2) & (c >= 1) & (c <= W - 2)
    coeff = (float(factor) * interior.astype(jnp.float32)).reshape(1, L)

    itemsize = jnp.dtype(x.dtype).itemsize
    # Native sublane packing multiple: 8 (f32), 16 (bf16), 32 (int8).
    sub = max(8, 32 // itemsize)

    if rows_tile is None:
        # Working-set bytes per row while a tile is in flight:
        #   2x input + 2x output double-buffers (I/O dtype)
        #   + ~4 tile-sized f32 temps (xf, t, acc, out) inside the kernel.
        per_row = 4 * L * itemsize + 4 * L * 4
        budget = 32 * 1024 * 1024   # working-set target; safe on v7x's 64 MiB/TC
        rows_tile = max(sub, (budget // per_row) // sub * sub)
        rows_tile = min(NC, rows_tile)
        # Guarantee >=2 grid steps when possible so the "parallel" axis can be
        # sharded across both v7x TensorCores (irrelevant on v5e/v6e: 1 TC).
        if NC >= 2 * sub:
            half = (-(-NC // 2) + sub - 1) // sub * sub
            rows_tile = min(rows_tile, half)

    grid = (pl.cdiv(NC, rows_tile),)

    # Explicit scoped-VMEM budget sized to the chosen tiles: v5e's default is
    # only 16 MiB (physical 128 MiB), v7x physical is 64 MiB/TC -> cap at 48 MiB.
    tile_io = rows_tile * L * itemsize
    tile_f32 = rows_tile * L * 4
    vmem_needed = 4 * tile_io + 4 * tile_f32 + 2 * L * 4
    vmem_limit = int(min(max(vmem_needed * 3 // 2, 16 * 1024 * 1024),
                         48 * 1024 * 1024))

    clamp = not (0.0 < float(factor) < 1.0)   # kornia _blend_one clamping rule
    kernel = functools.partial(_sharpen_kernel, W=W, clamp=clamp)

    out = pl.pallas_call(
        kernel,
        out_shape=jax.ShapeDtypeStruct((NC, L), x.dtype),
        grid=grid,
        in_specs=[
            pl.BlockSpec((rows_tile, L), lambda i: (i, 0)),
            pl.BlockSpec((1, L), lambda i: (0, 0)),
        ],
        out_specs=pl.BlockSpec((rows_tile, L), lambda i: (i, 0)),
        # Same shape/dtype, identical index maps, every element written ->
        # hazard-free alias of the input buffer.
        input_output_aliases={0: 0},
        compiler_params=pltpu.CompilerParams(
            dimension_semantics=("parallel",),
            vmem_limit_bytes=vmem_limit),
    )(x2d, coeff)
    return out.reshape(N, C, H, W)


def sharpen(x, factor, *, rows_tile=None):
    """Pallas implementation of Sharpen(factor).forward(x), x in NCHW.

    `factor` must be a static Python scalar: it selects the clamp branch and is
    baked into the coefficient row (matches the nn.Module's constructor arg).
    Keep I/O in bf16 when the surrounding pipeline tolerates it — the kernel
    widens to f32 internally, and halving bytes/elem helps this HBM-bound op.
    """
    return _sharpen_impl(x, float(factor), rows_tile)


def sharpen_ref(x, factor):
    """Pure-JAX reference (independent path: valid conv via static slices)."""
    N, C, H, W = x.shape
    k = jnp.array([[1.0, 1.0, 1.0], [1.0, 5.0, 1.0], [1.0, 1.0, 1.0]],
                  jnp.float32) / 13.0
    acc = jnp.zeros((N, C, H - 2, W - 2), jnp.float32)
    for dy in range(3):
        for dx in range(3):
            acc = acc + k[dy, dx] * x[:, :, dy:dy + H - 2, dx:dx + W - 2]
    deg = jnp.clip(acc, 0.0, 1.0)
    result = x.at[:, :, 1:H - 1, 1:W - 1].set(deg)
    out = x + factor * (result - x)
    if not (0.0 < factor < 1.0):
        out = jnp.clip(out, 0.0, 1.0)
    return out


if __name__ == "__main__":
    key = jax.random.PRNGKey(0)
    x = jax.random.uniform(key, (2, 4, 16, 16), dtype=jnp.float32)  # image in [0,1]
    factor = 2.0  # deterministic "sharpness strength" parameter of the module

    y = sharpen(x, factor)
    y = jax.block_until_ready(y)

    y_ref = sharpen_ref(x, factor)
    np.testing.assert_allclose(np.asarray(y), np.asarray(y_ref),
                               atol=1e-5, rtol=1e-5)
    print("KERNEL_OK")
</pallas_src>

<mosaic_0001>
module attributes {stable_mosaic.version = 11 : i64} {
  func.func @_sharpen_kernel(%arg0: i32, %arg1: memref<8x256xf32, #tpu.memory_space<vmem>>, %arg2: memref<1x256xf32, #tpu.memory_space<vmem>>, %arg3: memref<8x256xf32, #tpu.memory_space<vmem>>) attributes {dimension_semantics = [#tpu.dimension_semantics<parallel>], iteration_bounds = array<i64: 1>, scalar_prefetch = 0 : i64, scratch_operands = 0 : i64, tpu.core_type = #tpu.core_type<tc>, window_params = [{transform_indices = @transform_0, window_bounds = array<i64: 8, 256>}, {pipeline_mode = #tpu.pipeline_mode<synchronous>, transform_indices = @transform_1, window_bounds = array<i64: 1, 256>}, {transform_indices = @transform_2, window_bounds = array<i64: 8, 256>}]} {
    %c0 = arith.constant 0 : index
    %c0_0 = arith.constant 0 : index
    %0 = vector.load %arg1[%c0, %c0_0] : memref<8x256xf32, #tpu.memory_space<vmem>>, vector<8x256xf32>
    %c16_i32 = arith.constant 16 : i32
    %1 = tpu.dynamic_rotate %0 by %c16_i32 dim 1 : vector<8x256xf32>, i32 -> vector<8x256xf32>
    %2 = arith.addf %0, %1 : vector<8x256xf32>
    %c240_i32 = arith.constant 240 : i32
    %3 = tpu.dynamic_rotate %0 by %c240_i32 dim 1 : vector<8x256xf32>, i32 -> vector<8x256xf32>
    %4 = arith.addf %2, %3 : vector<8x256xf32>
    %c1_i32 = arith.constant 1 : i32
    %5 = tpu.dynamic_rotate %4 by %c1_i32 dim 1 : vector<8x256xf32>, i32 -> vector<8x256xf32>
    %6 = arith.addf %4, %5 : vector<8x256xf32>
    %c255_i32 = arith.constant 255 : i32
    %7 = tpu.dynamic_rotate %4 by %c255_i32 dim 1 : vector<8x256xf32>, i32 -> vector<8x256xf32>
    %8 = arith.addf %6, %7 : vector<8x256xf32>
    %cst = arith.constant 4.000000e+00 : f32
    %9 = vector.broadcast %cst : f32 to vector<8x256xf32>
    %10 = arith.mulf %9, %0 : vector<8x256xf32>
    %11 = arith.addf %8, %10 : vector<8x256xf32>
    %cst_1 = arith.constant 0.0769230798 : f32
    %12 = vector.broadcast %cst_1 : f32 to vector<8x256xf32>
    %13 = arith.mulf %11, %12 : vector<8x256xf32>
    %cst_2 = arith.constant 0.000000e+00 : f32
    %cst_3 = arith.constant 1.000000e+00 : f32
    %14 = vector.broadcast %cst_2 : f32 to vector<8x256xf32>
    %15 = arith.maximumf %14, %13 : vector<8x256xf32>
    %16 = vector.broadcast %cst_3 : f32 to vector<8x256xf32>
    %17 = arith.minimumf %16, %15 : vector<8x256xf32>
    %c0_4 = arith.constant 0 : index
    %c0_5 = arith.constant 0 : index
    %18 = vector.load %arg2[%c0_4, %c0_5] : memref<1x256xf32, #tpu.memory_space<vmem>>, vector<1x256xf32>
    %19 = arith.subf %17, %0 : vector<8x256xf32>
    %20 = vector.broadcast %18 : vector<1x256xf32> to vector<8x256xf32>
    %21 = arith.mulf %20, %19 : vector<8x256xf32>
    %22 = arith.addf %0, %21 : vector<8x256xf32>
    %cst_6 = arith.constant 0.000000e+00 : f32
    %cst_7 = arith.constant 1.000000e+00 : f32
    %23 = vector.broadcast %cst_6 : f32 to vector<8x256xf32>
    %24 = arith.maximumf %23, %22 : vector<8x256xf32>
    %25 = vector.broadcast %cst_7 : f32 to vector<8x256xf32>
    %26 = arith.minimumf %25, %24 : vector<8x256xf32>
    %c0_8 = arith.constant 0 : index
    %c0_9 = arith.constant 0 : index
    %27 = vector.load %arg3[%c0_8, %c0_9] : memref<8x256xf32, #tpu.memory_space<vmem>>, vector<8x256xf32>
    tpu.vector_store %arg3[%c0_8, %c0_9], %26 {strides = array<i32>} : memref<8x256xf32, #tpu.memory_space<vmem>>, vector<8x256xf32>,
    return
  }
  func.func @transform_0(%arg0: i32) -> (i32, i32) {
    %c0_i32 = arith.constant 0 : i32
    %c0_i32_0 = arith.constant 0 : i32
    return %arg0, %c0_i32 : i32, i32
  }
  func.func @transform_1(%arg0: i32) -> (i32, i32) {
    %c0_i32 = arith.constant 0 : i32
    %c0_i32_0 = arith.constant 0 : i32
    %c0_i32_1 = arith.constant 0 : i32
    return %c0_i32, %c0_i32_0 : i32, i32
  }
  func.func @transform_2(%arg0: i32) -> (i32, i32) {
    %c0_i32 = arith.constant 0 : i32
    %c0_i32_0 = arith.constant 0 : i32
    return %arg0, %c0_i32 : i32, i32
  }
}

</mosaic_0001>

<bundles_post_ra>
// kernel: _sharpen_impl.1
= control target key start
LH: loop header
LB: loop body
LE: loop exit
PB: predicated region body
PF: predicated region fallthrough
CT: control target
= control target key end

     0   :  { %s93_s11 = smov 112   ;;  %s94_s12 = smov 16   ;;  %v17_v2 = vlaneseq  ;;  %s135_s0 = inlined_call_operand.vmem [shape: f32[8,256], index: 0, kind: input, shape index: {}, may-alias: {0,2}]   ;;  %s136_s1 = inlined_call_operand.vmem [shape: f32[1,256], index: 1, kind: input, shape index: {}]   ;;  %s137_s2 = inlined_call_operand.vmem [shape: f32[8,256], index: 2, kind: output, shape index: {}, may-alias: {0,2}]  }
   0x1   :  { %v115_v0 = vld [vmem:[%s135_s0] sm:$0xff]  ;;  %v12_v1 = vld [vmem:[%s135_s0 + $0x8] sm:$0xff]  ;;  %s95_s0 = smov 1   ;;  %s96_s15 = smov 127  }
   0x2   :  { %24 = vrot.lane.b32.xlu1 %v115_v0, %s93_s11  ;;  %13 = vrot.lane.b32.xlu0 %v115_v0, %s94_s12  ;;  %v18_v3 = vand.u32 127, %v17_v2  ;;  %v52_v23 = vmul.f32 4.0, %v12_v1  ;;  %v51_v25 = vmul.f32 4.0, %v115_v0  ;;  %v66_v28 = vshrl.u32 %v17_v2, 7  ;;  %v61_v37 = vld [vmem:[%s136_s1] sm:$0x3] }
   0x4   :  { %vm19_vm0 = vcmp.lt.s32.totalorder %v18_v3, 16  ;;  %vm28_vm1 = vcmp.lt.s32.totalorder %v18_v3, 112  ;;  %vm37_vm2 = vcmp.lt.s32.totalorder %v18_v3, 1  ;;  %vm46_vm3 = vcmp.lt.s32.totalorder %v18_v3, 127 }
   0x5   :  { %v67_v33 = vsub.s32 0, %v66_v28  ;;  %v71_v34 = vsub.s32 1, %v66_v28 }
   0x6   :  { %26 = vrot.lane.b32.xlu1 %v12_v1, %s93_s11  ;;  %15 = vrot.lane.b32.xlu0 %v12_v1, %s94_s12 }
   0x7   :  { %v68_v40 = vrot.slane %v61_v37, %v67_v33  ;;  %v72_v41 = vrot.slane %v61_v37, %v71_v34 }
  0x74   :  { %v25_v4 = vpop.permute.xlu1 %24  ;;  %v14_v5 = vpop.permute.xlu0 %13 }
  0x78   :  { %v27_v6 = vpop.permute.xlu1 %26  ;;  %v16_v7 = vpop.permute.xlu0 %15 }
  0x79   :  { %v20_v8 = vsel %vm19_vm0, %v14_v5, %v16_v7  ;;  %v21_v9 = vsel %vm19_vm0, %v16_v7, %v14_v5  ;;  %v29_v12 = vsel %vm28_vm1, %v25_v4, %v27_v6  ;;  %v30_v13 = vsel %vm28_vm1, %v27_v6, %v25_v4 }
  0x7a   :  { %v22_v10 = vadd.f32 %v21_v9, %v115_v0  ;;  %v23_v11 = vadd.f32 %v20_v8, %v12_v1 }
  0x7c   :  { %v31_v14 = vadd.f32 %v29_v12, %v22_v10  ;;  %v32_v15 = vadd.f32 %v30_v13, %v23_v11 }
  0x7e   :  { %33 = vrot.lane.b32.xlu0 %v31_v14, %s95_s0  ;;  %35 = vrot.lane.b32.xlu1 %v32_v15, %s95_s0 }
  0x82   :  { %42 = vrot.lane.b32.xlu0 %v31_v14, %s96_s15  ;;  %44 = vrot.lane.b32.xlu1 %v32_v15, %s96_s15 }
  0xf0   :  { %v34_v16 = vpop.permute.xlu0 %33  ;;  %v36_v17 = vpop.permute.xlu1 %35 }
  0xf1   :  { %v38_v18 = vsel %vm37_vm2, %v34_v16, %v36_v17  ;;  %v39_v19 = vsel %vm37_vm2, %v36_v17, %v34_v16 }
  0xf2   :  { %v40_v20 = vadd.f32 %v39_v19, %v31_v14  ;;  %v41_v21 = vadd.f32 %v38_v18, %v32_v15 }
  0xf4   :  { %v43_v22 = vpop.permute.xlu0 %42  ;;  %v45_v24 = vpop.permute.xlu1 %44 }
  0xf5   :  { %v47_v26 = vsel %vm46_vm3, %v43_v22, %v45_v24  ;;  %v48_v27 = vsel %vm46_vm3, %v45_v24, %v43_v22 }
  0xf6   :  { %v49_v29 = vadd.f32 %v47_v26, %v40_v20  ;;  %v50_v30 = vadd.f32 %v48_v27, %v41_v21 }
  0xf8   :  { %v53_v31 = vadd.f32 %v51_v25, %v49_v29  ;;  %v54_v32 = vadd.f32 %v52_v23, %v50_v30 }
  0xfa   :  { %v55_v35 = vmul.f32 0.07692308, %v53_v31  ;;  %v56_v36 = vmul.f32 0.07692308, %v54_v32 }
  0xfc   :  { %v57_v38 = vmax.f32 %v55_v35, 0.0  ;;  %v58_v39 = vmax.f32 %v56_v36, 0.0 }
  0xfe   :  { %v59_v42 = vmin.f32 %v57_v38, 1.0  ;;  %v60_v43 = vmin.f32 %v58_v39, 1.0 }
 0x100   :  { %v62_v44 = vsub.f32 %v59_v42, %v115_v0  ;;  %v63_v45 = vsub.f32 %v60_v43, %v12_v1 }
 0x102   :  { %v75_v46 = vmul.f32 %v68_v40, %v62_v44  ;;  %v76_v47 = vmul.f32 %v72_v41, %v63_v45 }
 0x104   :  { %v77_v48 = vadd.f32 %v75_v46, %v115_v0  ;;  %v78_v49 = vadd.f32 %v76_v47, %v12_v1 }
 0x106   :  { %v79_v50 = vmax.f32 %v77_v48, 0.0  ;;  %v80_v51 = vmax.f32 %v78_v49, 0.0 }
 0x108   :  { %v81_v52 = vmin.f32 %v79_v50, 1.0  ;;  %v82_v53 = vmin.f32 %v80_v51, 1.0 }
 0x10a   :  { %83 = vst [vmem:[%s137_s2] sm:$0xff] %v81_v52  ;;  %84 = vst [vmem:[%s137_s2 + $0x8] sm:$0xff] %v82_v53 }

</bundles_post_ra>
